<compile_context>
chip_gen: v7x
topology: tpu7x:2x2x1
jax: 0.10.0
libtpu: 0.0.40
codegen_flags: <defaults>
</compile_context>

<pallas_src>
import math

import jax
import jax.numpy as jnp
from jax.experimental import pallas as pl
from jax.experimental.pallas import tpu as pltpu


# ----------------------------------------------------------------------------
# Fused kernel: Fourier features -> LayerNorm -> SwiGLU FFN
# ----------------------------------------------------------------------------
def _scalar_emb_kernel(scal_ref, freqs_ref, phases_ref, gamma_ref, beta_ref,
                       w1wg_ref, w2_ref, out_ref):
    # scal:   (TR, 1)   per-row scalar condition value
    # freqs:  (L, C)    Fourier frequencies (row pattern repeats every L rows)
    # phases: (L, C)    Fourier phases
    # gamma/beta: (1, C) LayerNorm affine params
    # w1wg:   (C, 2C)   concat of layer1 and gate weights, (in, out) layout, bf16
    # w2:     (C, C)    layer2 weights, (in, out) layout, bf16
    # out:    (TR, C)
    tr = scal_ref.shape[0]
    l, c = freqs_ref.shape
    reps = tr // l

    # Build the per-row Fourier table from the tiny resident (L, C) block.
    freqs = jnp.tile(freqs_ref[...], (reps, 1))     # (TR, C)
    phases = jnp.tile(phases_ref[...], (reps, 1))   # (TR, C)

    # FourierFeatures: cos(s * f + p) * gain, gain == 1 (normalize=False). f32.
    x = jnp.cos(scal_ref[...] * freqs + phases)

    # LayerNorm over channels (eps=1e-5, elementwise affine).
    # var = E[x^2] - mean^2: two independent reductions, one fewer full-tile temp.
    mean = jnp.mean(x, axis=-1, keepdims=True)
    mean_sq = jnp.mean(x * x, axis=-1, keepdims=True)
    var = mean_sq - mean * mean
    xn = (x - mean) * jax.lax.rsqrt(var + 1e-5)
    xn = xn * gamma_ref[...] + beta_ref[...]

    # SwiGLU FFN (dropout=0.0, bias-free): layer2( SiLU(layer1(x)) * gate(x) ).
    # One fused (C, 2C) matmul fills the 256-wide MXU; bf16 operands, f32 acc.
    xn_b = xn.astype(w1wg_ref.dtype)
    h12 = jnp.dot(xn_b, w1wg_ref[...], preferred_element_type=jnp.float32)  # (TR, 2C)
    h1 = h12[:, :c]
    hg = h12[:, c:]
    h = (h1 * jax.nn.sigmoid(h1)) * hg                                      # SiLU * gate
    y = jnp.dot(h.astype(w2_ref.dtype), w2_ref[...],
                preferred_element_type=jnp.float32)

    out_ref[...] = y.astype(out_ref.dtype)


def _pick_row_tile(total_rows: int, rows_per_scalar: int, *, sublane: int = 8,
                   target: int = 1024, min_steps: int = 1) -> int:
    """Row tile = largest divisor of total_rows that is <= cap and a multiple of
    lcm(sublane, L) (whole scalars per tile, aligned sublanes). When
    min_steps > 1 and the problem is big enough to amortize per-step overhead,
    cap is lowered so the grid has >= min_steps steps (v7x megacore sharding)."""
    step = (sublane * rows_per_scalar) // math.gcd(sublane, rows_per_scalar)
    cap = target
    if min_steps > 1 and total_rows >= max(2 * step, 256):
        cap = min(cap, total_rows // min_steps)
    cap = max(cap - (cap % step), step)
    if total_rows <= cap:
        return total_rows
    t = cap
    while t >= step:
        if total_rows % t == 0:
            return t
        t -= step
    return total_rows  # fallback: single full-extent block (always legal)


# ----------------------------------------------------------------------------
# Wrapper: ScalarEmb.forward
# ----------------------------------------------------------------------------
def scalar_emb_forward(element, freqs, phases, gamma, beta, w1, wg, w2, *,
                       num_token_per_scalar_condition: int,
                       num_scalar_condition: int,
                       num_channels: int,
                       output_key: str = "scalar_emb",
                       row_tile_target: int = 1024,   # raise to 2048-4096 on v6e
                       min_grid_steps: int = 2,       # >=2 shards rows across v7x cores
                       mxu_dtype=jnp.bfloat16):
    """Pallas implementation of ScalarEmb.forward.

    element : (B, num_scalar_condition) scalars
    freqs, phases : (num_channels * L,)  FourierFeatures buffers
    gamma, beta   : (num_channels,)      LayerNorm affine params
    w1, wg, w2    : (num_channels, num_channels) SwiGLU weights, (in, out) layout
    returns {output_key: (B, N*L, num_channels)}
    """
    L = num_token_per_scalar_condition
    N = num_scalar_condition
    C = num_channels
    B = element.shape[0]
    assert element.size == B * N, (
        f"element shape {element.shape} does not match with {B}x{N}")
    assert freqs.shape == (L * C,) and phases.shape == (L * C,)

    n_scal = B * N                 # total scalar conditions
    R = n_scal * L                 # total output rows
    out_dtype = element.dtype
    sublane = 8 if jnp.dtype(out_dtype).itemsize >= 4 else 16  # packed bf16 tiles
    TR = _pick_row_tile(R, L, sublane=sublane, target=row_tile_target,
                        min_steps=min_grid_steps)
    grid = (R // TR,)

    # Per-row scalar vector (each scalar repeated L times; tiny layout op).
    row_scal = jnp.repeat(element.reshape(-1).astype(jnp.float32), L).reshape(R, 1)

    # Tiny Fourier tables: (L, C) each (~1 KiB), resident via constant index_map.
    freqs_lc = freqs.astype(jnp.float32).reshape(L, C)
    phases_lc = phases.astype(jnp.float32).reshape(L, C)

    gamma2d = gamma.astype(jnp.float32).reshape(1, C)
    beta2d = beta.astype(jnp.float32).reshape(1, C)

    # Fused first projection: [w1 | wg] -> (C, 2C). bf16 operands for the MXU.
    w1wg = jnp.concatenate([w1, wg], axis=1).astype(mxu_dtype)
    w2m = w2.astype(mxu_dtype)

    wbytes = jnp.dtype(mxu_dtype).itemsize
    cost = pl.CostEstimate(
        flops=int(6 * R * C * C),                       # (C,2C) + (C,C) matmuls
        transcendentals=int(2 * R * C + R),             # cos + sigmoid + rsqrt
        bytes_accessed=int(R * 4 + (2 * L * C + 2 * C) * 4
                           + (w1wg.size + w2m.size) * wbytes
                           + R * C * jnp.dtype(out_dtype).itemsize),
    )

    rows = pl.pallas_call(
        _scalar_emb_kernel,
        out_shape=jax.ShapeDtypeStruct((R, C), out_dtype),
        grid_spec=pltpu.PrefetchScalarGridSpec(
            num_scalar_prefetch=0,
            grid=grid,
            in_specs=[
                pl.BlockSpec((TR, 1), lambda i: (i, 0)),      # per-row scalars
                pl.BlockSpec((L, C), lambda i: (0, 0)),       # freqs (resident)
                pl.BlockSpec((L, C), lambda i: (0, 0)),       # phases (resident)
                pl.BlockSpec((1, C), lambda i: (0, 0)),       # gamma
                pl.BlockSpec((1, C), lambda i: (0, 0)),       # beta
                pl.BlockSpec((C, 2 * C), lambda i: (0, 0)),   # [w1 | wg]
                pl.BlockSpec((C, C), lambda i: (0, 0)),       # w2
            ],
            out_specs=pl.BlockSpec((TR, C), lambda i: (i, 0)),
        ),
        compiler_params=pltpu.CompilerParams(
            dimension_semantics=("parallel",),
        ),
        cost_estimate=cost,
    )(row_scal, freqs_lc, phases_lc, gamma2d, beta2d, w1wg, w2m)

    # '(b n) l c -> b (n l) c' : rows are already (b, n, l)-major-contiguous,
    # so this is a free metadata reshape.
    return {output_key: rows.reshape(B, N * L, C)}


# ----------------------------------------------------------------------------
# AbstractEmbModel.random_dropout_input (inherited helper). `element` is a
# tiny (B, N) tensor, so a Pallas kernel would be pure per-step overhead;
# plain JAX is the right tool here.
# TODO(synk): per-batch bernoulli dropout stays in plain JAX (no Pallas win).
# ----------------------------------------------------------------------------
def scalar_emb_random_dropout_input(element, dropout_rate, rng_key):
    keep = jax.random.bernoulli(rng_key, 1.0 - dropout_rate,
                                (element.shape[0],)).astype(element.dtype)
    return element * keep.reshape((-1,) + (1,) * (element.ndim - 1))


# ----------------------------------------------------------------------------
# Pure-JAX reference (mirrors the PyTorch module exactly, f32 throughout)
# ----------------------------------------------------------------------------
def _scalar_emb_reference(element, freqs, phases, gamma, beta, w1, wg, w2,
                          B, N, L, C):
    s = element.reshape(-1).astype(jnp.float32)                  # (B*N,)
    x = jnp.cos(s[:, None] * freqs[None, :] + phases[None, :])   # (B*N, L*C)
    x = x.reshape(B * N, L, C)
    mean = x.mean(-1, keepdims=True)
    var = ((x - mean) ** 2).mean(-1, keepdims=True)
    xn = (x - mean) / jnp.sqrt(var + 1e-5) * gamma + beta
    h = jax.nn.silu(xn @ w1) * (xn @ wg)
    y = h @ w2
    return y.reshape(B, N * L, C)


if __name__ == "__main__":
    # Small shapes consistent with the module: batch=2, 4 scalar conditions,
    # 2 tokens per condition, 128 model channels (lane-dense last dim).
    B, N, L, C = 2, 4, 2, 128

    root = jax.random.PRNGKey(0)
    k_el, k_f, k_p, k_w1, k_wg, k_w2, k_drop = jax.random.split(root, 7)

    element = jax.random.normal(k_el, (B, N), dtype=jnp.float32)

    # FourierFeatures buffers: 2*pi*randn / 2*pi*rand, length C*L.
    freqs = 2.0 * jnp.pi * jax.random.normal(k_f, (L * C,), dtype=jnp.float32)
    phases = 2.0 * jnp.pi * jax.random.uniform(k_p, (L * C,), dtype=jnp.float32)

    # LayerNorm params (default init) and SwiGLU weights ((in, out) layout).
    gamma = jnp.ones((C,), jnp.float32)
    beta = jnp.zeros((C,), jnp.float32)
    scale = 1.0 / math.sqrt(C)
    w1 = jax.random.normal(k_w1, (C, C), dtype=jnp.float32) * scale
    wg = jax.random.normal(k_wg, (C, C), dtype=jnp.float32) * scale
    w2 = jax.random.normal(k_w2, (C, C), dtype=jnp.float32) * scale

    out = scalar_emb_forward(
        element, freqs, phases, gamma, beta, w1, wg, w2,
        num_token_per_scalar_condition=L,
        num_scalar_condition=N,
        num_channels=C,
        output_key="crossattn_scalar_emb",
    )
    emb = out["crossattn_scalar_emb"]
    jax.block_until_ready(emb)
    assert emb.shape == (B, N * L, C)

    ref = _scalar_emb_reference(element, freqs, phases, gamma, beta,
                                w1, wg, w2, B, N, L, C)
    # bf16 MXU operands with f32 accumulation: expect ~1e-2-level deviation.
    assert bool(jnp.allclose(emb, ref, atol=5e-2, rtol=5e-2)), (
        float(jnp.max(jnp.abs(emb - ref))))

    # Inherited random_dropout_input helper (plain JAX, element is tiny).
    dropped = scalar_emb_random_dropout_input(element, 0.5, k_drop)
    jax.block_until_ready(dropped)
    keep_ref = jax.random.bernoulli(k_drop, 0.5, (B,)).astype(element.dtype)
    assert bool(jnp.allclose(dropped, element * keep_ref[:, None]))

    print("KERNEL_OK")
</pallas_src>

<mosaic_0001>
module attributes {stable_mosaic.version = 11 : i64} {
  func.func @_scalar_emb_kernel(%arg0: i32, %arg1: memref<16x1xf32, #tpu.memory_space<vmem>>, %arg2: memref<2x128xf32, #tpu.memory_space<vmem>>, %arg3: memref<2x128xf32, #tpu.memory_space<vmem>>, %arg4: memref<1x128xf32, #tpu.memory_space<vmem>>, %arg5: memref<1x128xf32, #tpu.memory_space<vmem>>, %arg6: memref<128x256xbf16, #tpu.memory_space<vmem>>, %arg7: memref<128x128xbf16, #tpu.memory_space<vmem>>, %arg8: memref<16x128xf32, #tpu.memory_space<vmem>>) attributes {dimension_semantics = [#tpu.dimension_semantics<parallel>], iteration_bounds = array<i64: 1>, scalar_prefetch = 0 : i64, scratch_operands = 0 : i64, tpu.core_type = #tpu.core_type<tc>, window_params = [{transform_indices = @transform_0, window_bounds = array<i64: 16, 1>}, {pipeline_mode = #tpu.pipeline_mode<synchronous>, transform_indices = @transform_1, window_bounds = array<i64: 2, 128>}, {pipeline_mode = #tpu.pipeline_mode<synchronous>, transform_indices = @transform_2, window_bounds = array<i64: 2, 128>}, {pipeline_mode = #tpu.pipeline_mode<synchronous>, transform_indices = @transform_3, window_bounds = array<i64: 1, 128>}, {pipeline_mode = #tpu.pipeline_mode<synchronous>, transform_indices = @transform_4, window_bounds = array<i64: 1, 128>}, {pipeline_mode = #tpu.pipeline_mode<synchronous>, transform_indices = @transform_5, window_bounds = array<i64: 128, 256>}, {pipeline_mode = #tpu.pipeline_mode<synchronous>, transform_indices = @transform_6, window_bounds = array<i64: 128, 128>}, {transform_indices = @transform_7, window_bounds = array<i64: 16, 128>}]} {
    %c0 = arith.constant 0 : index
    %c0_0 = arith.constant 0 : index
    %0 = vector.load %arg2[%c0, %c0_0] : memref<2x128xf32, #tpu.memory_space<vmem>>, vector<2x128xf32>
    %1 = tpu.concatenate %0, %0, %0, %0, %0, %0, %0, %0 in 0 : vector<2x128xf32>, vector<2x128xf32>, vector<2x128xf32>, vector<2x128xf32>, vector<2x128xf32>, vector<2x128xf32>, vector<2x128xf32>, vector<2x128xf32> -> vector<16x128xf32>
    %c0_1 = arith.constant 0 : index
    %c0_2 = arith.constant 0 : index
    %2 = vector.load %arg3[%c0_1, %c0_2] : memref<2x128xf32, #tpu.memory_space<vmem>>, vector<2x128xf32>
    %3 = tpu.concatenate %2, %2, %2, %2, %2, %2, %2, %2 in 0 : vector<2x128xf32>, vector<2x128xf32>, vector<2x128xf32>, vector<2x128xf32>, vector<2x128xf32>, vector<2x128xf32>, vector<2x128xf32>, vector<2x128xf32> -> vector<16x128xf32>
    %c0_3 = arith.constant 0 : index
    %c0_4 = arith.constant 0 : index
    %4 = vector.load %arg1[%c0_3, %c0_4] : memref<16x1xf32, #tpu.memory_space<vmem>>, vector<16x1xf32>
    %5 = vector.broadcast %4 : vector<16x1xf32> to vector<16x128xf32>
    %6 = arith.mulf %5, %1 : vector<16x128xf32>
    %7 = arith.addf %6, %3 : vector<16x128xf32>
    %8 = math.cos %7 : vector<16x128xf32>
    %cst = arith.constant dense<0.000000e+00> : vector<16xf32>
    %9 = vector.multi_reduction <add>, %8, %cst [1] : vector<16x128xf32> to vector<16xf32>
    %10 = vector.shape_cast %9 : vector<16xf32> to vector<16x1xf32>
    %cst_5 = arith.constant 1.280000e+02 : f32
    %11 = vector.broadcast %cst_5 : f32 to vector<16x1xf32>
    %12 = arith.divf %10, %11 : vector<16x1xf32>
    %13 = arith.mulf %8, %8 : vector<16x128xf32>
    %cst_6 = arith.constant dense<0.000000e+00> : vector<16xf32>
    %14 = vector.multi_reduction <add>, %13, %cst_6 [1] : vector<16x128xf32> to vector<16xf32>
    %15 = vector.shape_cast %14 : vector<16xf32> to vector<16x1xf32>
    %cst_7 = arith.constant 1.280000e+02 : f32
    %16 = vector.broadcast %cst_7 : f32 to vector<16x1xf32>
    %17 = arith.divf %15, %16 : vector<16x1xf32>
    %18 = arith.mulf %12, %12 : vector<16x1xf32>
    %19 = arith.subf %17, %18 : vector<16x1xf32>
    %20 = vector.broadcast %12 : vector<16x1xf32> to vector<16x128xf32>
    %21 = arith.subf %8, %20 : vector<16x128xf32>
    %cst_8 = arith.constant 9.99999974E-6 : f32
    %22 = vector.broadcast %cst_8 : f32 to vector<16x1xf32>
    %23 = arith.addf %19, %22 : vector<16x1xf32>
    %24 = math.rsqrt %23 : vector<16x1xf32>
    %25 = vector.broadcast %24 : vector<16x1xf32> to vector<16x128xf32>
    %26 = arith.mulf %21, %25 : vector<16x128xf32>
    %c0_9 = arith.constant 0 : index
    %c0_10 = arith.constant 0 : index
    %27 = vector.load %arg4[%c0_9, %c0_10] : memref<1x128xf32, #tpu.memory_space<vmem>>, vector<1x128xf32>
    %28 = vector.broadcast %27 : vector<1x128xf32> to vector<16x128xf32>
    %29 = arith.mulf %26, %28 : vector<16x128xf32>
    %c0_11 = arith.constant 0 : index
    %c0_12 = arith.constant 0 : index
    %30 = vector.load %arg5[%c0_11, %c0_12] : memref<1x128xf32, #tpu.memory_space<vmem>>, vector<1x128xf32>
    %31 = vector.broadcast %30 : vector<1x128xf32> to vector<16x128xf32>
    %32 = arith.addf %29, %31 : vector<16x128xf32>
    %33 = arith.truncf %32 : vector<16x128xf32> to vector<16x128xbf16>
    %c0_13 = arith.constant 0 : index
    %c0_14 = arith.constant 0 : index
    %34 = vector.load %arg6[%c0_13, %c0_14] : memref<128x256xbf16, #tpu.memory_space<vmem>>, vector<128x256xbf16>
    %cst_15 = arith.constant dense<0.000000e+00> : vector<16x256xf32>
    %35 = tpu.matmul %33, %34, %cst_15 {dimension_numbers = #tpu.dot_dimension_numbers<[1], [0], [0], [1], [0, 0, 1, 1], [], []>} : vector<16x128xbf16>, vector<128x256xbf16>, vector<16x256xf32> -> vector<16x256xf32>
    %36 = vector.extract_strided_slice %35 {offsets = [0, 0], sizes = [16, 128], strides = [1, 1]} : vector<16x256xf32> to vector<16x128xf32>
    %37 = vector.extract_strided_slice %35 {offsets = [0, 128], sizes = [16, 128], strides = [1, 1]} : vector<16x256xf32> to vector<16x128xf32>
    %38 = arith.negf %36 : vector<16x128xf32>
    %39 = math.exp %38 : vector<16x128xf32>
    %cst_16 = arith.constant 1.000000e+00 : f32
    %40 = vector.broadcast %cst_16 : f32 to vector<16x128xf32>
    %41 = arith.addf %40, %39 : vector<16x128xf32>
    %42 = arith.divf %40, %41 : vector<16x128xf32>
    %43 = arith.mulf %36, %42 : vector<16x128xf32>
    %44 = arith.mulf %43, %37 : vector<16x128xf32>
    %45 = arith.truncf %44 : vector<16x128xf32> to vector<16x128xbf16>
    %c0_17 = arith.constant 0 : index
    %c0_18 = arith.constant 0 : index
    %46 = vector.load %arg7[%c0_17, %c0_18] : memref<128x128xbf16, #tpu.memory_space<vmem>>, vector<128x128xbf16>
    %cst_19 = arith.constant dense<0.000000e+00> : vector<16x128xf32>
    %47 = tpu.matmul %45, %46, %cst_19 {dimension_numbers = #tpu.dot_dimension_numbers<[1], [0], [0], [1], [0, 0, 1, 1], [], []>} : vector<16x128xbf16>, vector<128x128xbf16>, vector<16x128xf32> -> vector<16x128xf32>
    %c0_20 = arith.constant 0 : index
    %c0_21 = arith.constant 0 : index
    %48 = vector.load %arg8[%c0_20, %c0_21] : memref<16x128xf32, #tpu.memory_space<vmem>>, vector<16x128xf32>
    tpu.vector_store %arg8[%c0_20, %c0_21], %47 {strides = array<i32>} : memref<16x128xf32, #tpu.memory_space<vmem>>, vector<16x128xf32>,
    return
  }
  func.func @transform_0(%arg0: i32) -> (i32, i32) {
    %c0_i32 = arith.constant 0 : i32
    %c0_i32_0 = arith.constant 0 : i32
    return %arg0, %c0_i32 : i32, i32
  }
  func.func @transform_1(%arg0: i32) -> (i32, i32) {
    %c0_i32 = arith.constant 0 : i32
    %c0_i32_0 = arith.constant 0 : i32
    %c0_i32_1 = arith.constant 0 : i32
    return %c0_i32, %c0_i32_0 : i32, i32
  }
  func.func @transform_2(%arg0: i32) -> (i32, i32) {
    %c0_i32 = arith.constant 0 : i32
    %c0_i32_0 = arith.constant 0 : i32
    %c0_i32_1 = arith.constant 0 : i32
    return %c0_i32, %c0_i32_0 : i32, i32
  }
  func.func @transform_3(%arg0: i32) -> (i32, i32) {
    %c0_i32 = arith.constant 0 : i32
    %c0_i32_0 = arith.constant 0 : i32
    %c0_i32_1 = arith.constant 0 : i32
    return %c0_i32, %c0_i32_0 : i32, i32
  }
  func.func @transform_4(%arg0: i32) -> (i32, i32) {
    %c0_i32 = arith.constant 0 : i32
    %c0_i32_0 = arith.constant 0 : i32
    %c0_i32_1 = arith.constant 0 : i32
    return %c0_i32, %c0_i32_0 : i32, i32
  }
  func.func @transform_5(%arg0: i32) -> (i32, i32) {
    %c0_i32 = arith.constant 0 : i32
    %c0_i32_0 = arith.constant 0 : i32
    %c0_i32_1 = arith.constant 0 : i32
    return %c0_i32, %c0_i32_0 : i32, i32
  }
  func.func @transform_6(%arg0: i32) -> (i32, i32) {
    %c0_i32 = arith.constant 0 : i32
    %c0_i32_0 = arith.constant 0 : i32
    %c0_i32_1 = arith.constant 0 : i32
    return %c0_i32, %c0_i32_0 : i32, i32
  }
  func.func @transform_7(%arg0: i32) -> (i32, i32) {
    %c0_i32 = arith.constant 0 : i32
    %c0_i32_0 = arith.constant 0 : i32
    return %arg0, %c0_i32 : i32, i32
  }
}

</mosaic_0001>

<bundles_post_ra>
// kernel: tpu_custom_call.1
= control target key start
LH: loop header
LB: loop body
LE: loop exit
PB: predicated region body
PF: predicated region fallthrough
CT: control target
= control target key end

     0   :  { %12 = vsyncpa [#allocation3], 0  ;;  %s1049_s0 = inlined_call_operand.vmem [shape: f32[16,1], index: 0, kind: input, shape index: {}]   ;;  %s1050_s1 = inlined_call_operand.vmem [shape: f32[2,128], index: 1, kind: input, shape index: {}]   ;;  %s1051_s2 = inlined_call_operand.vmem [shape: f32[2,128], index: 2, kind: input, shape index: {}]   ;;  %s1052_s3 = inlined_call_operand.vmem [shape: f32[1,128], index: 3, kind: input, shape index: {}]   ;;  %s1053_s4 = inlined_call_operand.vmem [shape: f32[1,128], index: 4, kind: input, shape index: {}]   ;;  %s1054_s5 = inlined_call_operand.hbm [shape: bf16[128,256], index: 5, kind: input, shape index: {}]   ;;  %s1055_s6 = inlined_call_operand.hbm [shape: bf16[128,128], index: 6, kind: input, shape index: {}]   ;;  %s1056_s7 = inlined_call_operand.hbm [shape: f32[16,128], index: 7, kind: output, shape index: {}]  }
   0x1   :  { %13 = vsyncpa [#allocation6], 0 }
   0x2   :  { %14 = vsyncpa [#allocation4], 0  ;;  %s844_s24 = smov [#allocation2]   ;;  %s772_s28 = scalar_lea.hbm %s1054_s5, 2048 }
   0x3   :  { %s30_s25 = sshll.u32 %s844_s24, 4  ;;  %p773_p0 = scmp.ne.s32.totalorder %s1054_s5, %s772_s28  ;;  %s31_s25 = int_to_ptr.vmem [resolvable:$true] %s30_s25 }
   0x4   :  { %p776_p1 = scmp.lt.u32.totalorder %s772_s28, %s1054_s5 }
   0x6   :  { %p778_p2 = pnand %p776_p1, %p773_p0 }
   0x8   :  { %781 = shalt.err (!%p778_p2)
}
   0x9   :  { %s782_s10 = scalar_lea.vmem %s31_s25, 2048  ;;  %p787_p4 = scmp.lt.s32.totalorder %s31_s25, %s31_s25 }
   0xa   :  { %p783_p3 = scmp.ne.s32.totalorder %s31_s25, %s782_s10  ;;  %p788_p5 = scmp.lt.s32.totalorder %s782_s10, %s782_s10 }
   0xc   :  { %p789_p6 = por %p788_p5, %p787_p4 }
   0xe   :  { %p790_p7 = pnand %p789_p6, %p783_p3 }
  0x10   :  { %793 = shalt.err (!%p790_p7)
}
  0x11   :  { %s845_s11 = smov 128   ;;  %s846_s12 = smov 8  }
  0x12   :  { %36 = dma.hbm_to_vmem [thread:$0]  %s1054_s5, 2048, %s31_s25, [#allocation3], %s845_s11, %s845_s11, %s846_s12  }
  0x13   :  { %s847_s15 = smov [#allocation5]   ;;  %s794_s19 = scalar_lea.hbm %s1055_s6, 1024 }
  0x14   :  { %s42_s16 = sshll.u32 %s847_s15, 4  ;;  %p795_p8 = scmp.ne.s32.totalorder %s1055_s6, %s794_s19  ;;  %s43_s16 = int_to_ptr.vmem [resolvable:$true] %s42_s16 }
  0x15   :  { %p798_p9 = scmp.lt.u32.totalorder %s794_s19, %s1055_s6 }
  0x17   :  { %p800_p10 = pnand %p798_p9, %p795_p8 }
  0x19   :  { %803 = shalt.err (!%p800_p10)
}
  0x1a   :  { %s804_s24 = scalar_lea.vmem %s43_s16, 1024  ;;  %p809_p12 = scmp.lt.s32.totalorder %s43_s16, %s43_s16 }
  0x1b   :  { %p805_p11 = scmp.ne.s32.totalorder %s43_s16, %s804_s24  ;;  %p810_p13 = scmp.lt.s32.totalorder %s804_s24, %s804_s24 }
  0x1d   :  { %p811_p0 = por %p810_p13, %p809_p12 }
  0x1f   :  { %p812_p1 = pnand %p811_p0, %p805_p11 }
  0x21   :  { %815 = shalt.err (!%p812_p1)
}
  0x22   :  { %s848_s5 = smov 64   ;;  %s849_s25 = smov 4  }
  0x23   :  { %48 = dma.hbm_to_vmem [thread:$0]  %s1055_s6, 1024, %s43_s16, [#allocation6], %s848_s5, %s848_s5, %s849_s25  }
  0x24   :  { %838 = dma.done.wait [#allocation3], 2048  }
  0x25   :  { %839 = vsyncadd [#allocation3], 4294965248 }
  0x26   :  { %840 = dma.done.wait [#allocation6], 1024  }
  0x27   :  { %841 = vsyncadd [#allocation6], 4294966272  ;;  %v850_v0 = vmov 0   ;;  %v81_v1 = vld [vmem:[%s1049_s0] sm:$0xff]  ;;  %v82_v2 = vld [vmem:[%s1049_s0 + $0x8] sm:$0xff]  ;;  %vm64_vm0 = vcmask 1041408  }
  0x28   :  { %719 = vset.pattern.permute.xlu0 %v850_v0  ;;  %477 = vmatprep.mubr.bf16.mxu0 %v850_v0  ;;  %v56_v3 = vld [vmem:[%s1050_s1] sm:$0x3]  ;;  %vm66_vm1 = vcmask 1043456   ;;  %vm68_vm2 = vcmask 1045504   ;;  %v851_v44 = vmov 683565275  }
  0x29   :  { %85 = vperm.xlu0 %719, %v81_v1   ;;  %v70_v4 = vld [vmem:[%s1051_s2] sm:$0x3]  ;;  %v58_v5 = vrot.slane %v56_v3, 6  ;;  %v60_v7 = vrot.slane %v56_v3, 4  ;;  %v62_v10 = vrot.slane %v56_v3, 2 }
  0x2a   :  { %v72_v6 = vrot.slane %v70_v4, 6  ;;  %v74_v9 = vrot.slane %v70_v4, 4  ;;  %v76_v13 = vrot.slane %v70_v4, 2  ;;  %v852_v46 = vmov 2475754826  }
  0x2b   :  { %v65_v8 = vsel %vm64_vm0, %v56_v3, %v58_v5  ;;  %v853_v48 = vmov 2131351028   ;;  %v854_v52 = vmov 2102212464   ;;  %v855_v54 = vmov 920167782  }
  0x2c   :  { %v78_v11 = vsel %vm64_vm0, %v70_v4, %v72_v6  ;;  %v67_v12 = vsel %vm66_vm1, %v65_v8, %v60_v7  ;;  %v856_v59 = vmov 1326507024  }
  0x2d   :  { %90 = vperm.xlu0 %719, %v82_v2   ;;  %v79_v14 = vsel %vm66_vm1, %v78_v11, %v74_v9  ;;  %v69_v15 = vsel %vm68_vm2, %v67_v12, %v62_v10 }
  0x2e   :  { %v80_v17 = vsel %vm68_vm2, %v79_v14, %v76_v13 }
  0xa8   :  { %v86_v16 = vpop.permute.xlu0 %85 }
  0xa9   :  { %v93_v18 = vmul.f32 %v86_v16, %v69_v15 }
  0xab   :  { %v939_v19 = vadd.f32 %v93_v18, %v80_v17 }
  0xac   :  { %v91_v20 = vpop.permute.xlu0 %90 }
  0xad   :  { %v100_v21 = vand.u32 2139095040, %v939_v19  ;;  %v94_v22 = vmul.f32 %v91_v20, %v69_v15  ;;  %v97_v23 = vand.u32 2147483647, %v939_v19  ;;  %vm99_vm1 = vcmp.lt.s32.totalorder %v939_v19, 0 }
  0xaf   :  { %v101_v24 = vshrl.u32 %v100_v21, 23  ;;  %v943_v25 = vadd.f32 %v94_v22, %v80_v17  ;;  %v104_v26 = vand.u32 8388607, %v97_v23  ;;  %vm98_vm2 = vcmp.le.f32.partialorder %v97_v23, 0.7853982 }
  0xb1   :  { %v630_v27 = vadd.s32 4294967169, %v101_v24  ;;  %v203_v28 = vand.u32 2139095040, %v943_v25  ;;  %v200_v29 = vand.u32 2147483647, %v943_v25  ;;  %v105_v32 = vor.u32 8388608, %v104_v26 }
  0xb3   :  { %v107_v30 = vadd.s32 1, %v630_v27  ;;  %v204_v31 = vshrl.u32 %v203_v28, 23  ;;  %v207_v33 = vand.u32 8388607, %v200_v29  ;;  %v951_v39 = vshll.u32 %v105_v32, 8 }
  0xb5   :  { %vm108_vm3 = vcmp.gt.s32.totalorder %v107_v30, 0  ;;  %v634_v34 = vadd.s32 4294967169, %v204_v31  ;;  %v208_v36 = vor.u32 8388608, %v207_v33 }
  0xb6   :  { %v109_v35 = vsel %vm108_vm3, %v107_v30, 0  ;;  %vm202_vm3 = vcmp.lt.s32.totalorder %v943_v25, 0 }
  0xb7   :  { %v111_v37 = vand.u32 31, %v109_v35  ;;  %v210_v38 = vadd.s32 1, %v634_v34  ;;  %v110_v40 = vshrl.u32 %v109_v35, 5  ;;  %v953_v42 = vshll.u32 %v208_v36, 8 }
  0xb9   :  { %v112_v41 = vsub.s32 32, %v111_v37  ;;  %vm211_vm4 = vcmp.gt.s32.totalorder %v210_v38, 0  ;;  %v114_v45 = vshll.u32 %v851_v44, %v111_v37  ;;  %v117_v47 = vshll.u32 %v852_v46, %v111_v37 }
  0xba   :  { %v212_v43 = vsel %vm211_vm4, %v210_v38, 0  ;;  %v120_v49 = vshll.u32 %v853_v48, %v111_v37  ;;  %v123_v53 = vshll.u32 %v854_v52, %v111_v37  ;;  %v126_v55 = vshll.u32 %v855_v54, %v111_v37 }
  0xbb   :  { %v214_v50 = vand.u32 31, %v212_v43  ;;  %v115_v51 = vshrl.u32 %v852_v46, %v112_v41  ;;  %v118_v56 = vshrl.u32 %v853_v48, %v112_v41  ;;  %v121_v57 = vshrl.u32 %v854_v52, %v112_v41 }
  0xbc   :  { %v124_v58 = vshrl.u32 %v855_v54, %v112_v41  ;;  %v127_v60 = vshrl.u32 %v856_v59, %v112_v41  ;;  %v955_v61 = vshrl.u32 %v212_v43, 5  ;;  %v113_v63 = vshrl.u32 %v851_v44, %v112_v41 }
  0xbd   :  { %v215_v62 = vsub.s32 32, %v214_v50  ;;  %v116_v0 = vor.u32 %v115_v51, %v114_v45  ;;  %v119_v1 = vor.u32 %v118_v56, %v117_v47  ;;  %v122_v2 = vor.u32 %v121_v57, %v120_v49 }
  0xbe   :  { %v125_v3 = vor.u32 %v124_v58, %v123_v53  ;;  %v128_v4 = vor.u32 %v127_v60, %v126_v55  ;;  %vm129_vm5 = vcmp.lt.s32.totalorder %v110_v40, 1  ;;  %vm130_vm6 = vcmp.lt.s32.totalorder %v110_v40, 2 }
  0xbf   :  { %vm131_vm7 = vcmp.lt.s32.totalorder %v110_v40, 3  ;;  %vm132_vm8 = vcmp.lt.s32.totalorder %v110_v40, 4  ;;  %v137_v6 = vsel %vm129_vm5, %v116_v0, %v119_v1  ;;  %v141_v8 = vsel %vm129_vm5, %v119_v1, %v122_v2 }
  0xc0   :  { %v134_v5 = vsel %vm132_vm8, %v122_v2, 2102212464  ;;  %v138_v7 = vsel %vm132_vm8, %v125_v3, 920167782  ;;  %v133_v9 = vsel %vm129_vm5, %v113_v63, %v116_v0  ;;  %v142_v12 = vsel %vm132_vm8, %v128_v4, 1326507024 }
  0xc1   :  { %v135_v10 = vsel %vm131_vm7, %v119_v1, %v134_v5  ;;  %v139_v11 = vsel %vm131_vm7, %v122_v2, %v138_v7  ;;  %v143_v14 = vsel %vm131_vm7, %v125_v3, %v142_v12  ;;  %v217_v15 = vshll.u32 %v851_v44, %v214_v50 }
  0xc2   :  { %v140_v13 = vsel %vm130_vm6, %v137_v6, %v139_v11  ;;  %v218_v16 = vshrl.u32 %v852_v46, %v215_v62  ;;  %v144_v17 = vsel %vm130_vm6, %v141_v8, %v143_v14  ;;  %v216_v21 = vshrl.u32 %v851_v44, %v215_v62 }
  0xc3   :  { %v960_v18 = vmul.u32.u64.low %v951_v39, %v140_v13  ;;  %v961_v20 = vmul.u32.u64.high %v951_v39, %v140_v13, %v960_v18  ;;  %v136_v22 = vsel %vm130_vm6, %v133_v9, %v135_v10  ;;  %v220_v28 = vshll.u32 %v852_v46, %v214_v50 }
  0xc4   :  { %v966_v24 = vmul.u32.u64.low %v951_v39, %v144_v17  ;;  %v967_v26 = vmul.u32.u64.high %v951_v39, %v144_v17, %v966_v24  ;;  %v219_v27 = vor.u32 %v218_v16, %v217_v15  ;;  %v221_v30 = vshrl.u32 %v853_v48, %v215_v62 }
  0xc5   :  { %v223_v31 = vshll.u32 %v853_v48, %v214_v50  ;;  %v224_v32 = vshrl.u32 %v854_v52, %v215_v62  ;;  %v226_v33 = vshll.u32 %v854_v52, %v214_v50  ;;  %v227_v34 = vshrl.u32 %v855_v54, %v215_v62 }
  0xc6   :  { %v229_v35 = vshll.u32 %v855_v54, %v214_v50  ;;  %v230_v36 = vshrl.u32 %v856_v59, %v215_v62  ;;  %v152_v37 = vmul.u32 %v951_v39, %v136_v22  ;;  %v155_v38 = vadd.s32 1, %v961_v20 }
  0xc7   :  { %v222_v41 = vor.u32 %v221_v30, %v220_v28  ;;  %v225_v40 = vor.u32 %v224_v32, %v223_v31  ;;  %vm154_vm9 = vc.u32 %v967_v26, %v960_v18  ;;  %v228_v43 = vor.u32 %v227_v34, %v226_v33 }
  0xc8   :  { %v231_v44 = vor.u32 %v230_v36, %v229_v35  ;;  %vm232_vm10 = vcmp.lt.s32.totalorder %v955_v61, 1  ;;  %v156_v45 = vsel %vm154_vm9, %v155_v38, %v961_v20  ;;  %vm233_vm11 = vcmp.lt.s32.totalorder %v955_v61, 2 }
  0xc9   :  { %vm234_vm12 = vcmp.lt.s32.totalorder %v955_v61, 3  ;;  %vm235_vm13 = vcmp.lt.s32.totalorder %v955_v61, 4  ;;  %v157_v39 = vadd.s32 %v156_v45, %v152_v37  ;;  %v240_v47 = vsel %vm232_vm10, %v219_v27, %v222_v41 }
  0xca   :  { %v237_v46 = vsel %vm235_vm13, %v225_v40, 2102212464  ;;  %v241_v48 = vsel %vm235_vm13, %v228_v43, 920167782  ;;  %v236_v49 = vsel %vm232_vm10, %v216_v21, %v219_v27  ;;  %v244_v51 = vsel %vm232_vm10, %v222_v41, %v225_v40 }
  0xcb   :  { %v242_v50 = vsel %vm234_vm12, %v225_v40, %v241_v48  ;;  %v245_v52 = vsel %vm235_vm13, %v231_v44, 1326507024  ;;  %v158_v53 = vadd.s32 536870912, %v157_v39  ;;  %v238_v54 = vsel %vm234_vm12, %v222_v41, %v237_v46 }
  0xcc   :  { %v243_v55 = vsel %vm233_vm11, %v240_v47, %v242_v50  ;;  %v246_v56 = vsel %vm234_vm12, %v228_v43, %v245_v52  ;;  %v239_v0 = vsel %vm233_vm11, %v236_v49, %v238_v54  ;;  %vm1009_vm4 = vcmp.le.f32.partialorder %v200_v29, 0.7853982 }
  0xcd   :  { %v247_v57 = vsel %vm233_vm11, %v244_v51, %v246_v56  ;;  %v983_v58 = vmul.u32.u64.low %v953_v42, %v243_v55  ;;  %v984_v59 = vmul.u32.u64.high %v953_v42, %v243_v55, %v983_v58  ;;  %v159_v60 = vshrl.u32 %v158_v53, 30 }
  0xce   :  { %v987_v62 = vmul.u32.u64.low %v953_v42, %v247_v57  ;;  %v988_v63 = vmul.u32.u64.high %v953_v42, %v247_v57, %v987_v62  ;;  %v255_v4 = vmul.u32 %v953_v42, %v239_v0  ;;  %v153_v42 = vadd.s32 %v960_v18, %v967_v26 }
  0xcf   :  { %v160_v1 = vshll.u32 %v159_v60, 30  ;;  %v258_v2 = vadd.s32 1, %v984_v59  ;;  %v183_v45 = vsub.s32 4, %v159_v60  ;;  %vm189_vm8 = vweird.f32 %v939_v19 }
  0xd0   :  { %vm257_vm14 = vc.u32 %v988_v63, %v983_v58  ;;  %v256_v37 = vadd.s32 %v983_v58, %v988_v63  ;;  %vm292_vm12 = vweird.f32 %v943_v25  ;;  %vm858_vm13 = vmmov 0  }
  0xd1   :  { %v161_v3 = vsub.s32 %v157_v39, %v160_v1  ;;  %v259_v5 = vsel %vm257_vm14, %v258_v2, %v984_v59  ;;  %v184_v49 = vsel %vm99_vm1, %v183_v45, %v159_v60 }
  0xd2   :  { %v260_v7 = vadd.s32 %v259_v5, %v255_v4  ;;  %v186_v52 = vsel %vm98_vm2, 0, %v184_v49 }
  0xd3   :  { %v163_v6 = vsub.s32 0, %v161_v3  ;;  %v190_v55 = vand.u32 3, %v186_v52 }
  0xd4   :  { %v261_v9 = vadd.s32 536870912, %v260_v7 }
  0xd5   :  { %v631_v8 = vmin.u32 %v163_v6, %v161_v3  ;;  %vm195_vm5 = vcmp.eq.s32.totalorder %v190_v55, 2  ;;  %vm192_vm6 = vcmp.eq.s32.totalorder %v190_v55, 0  ;;  %vm191_vm7 = vcmp.lt.s32.totalorder %v190_v55, 2  ;;  %v639_v55 = vld [vmem:[%s1053_s4] ss:$0 sm:$0xff] }
  0xd6   :  { %v996_v11 = vshrl.u32 %v261_v9, 30 }
  0xd7   :  { %v165_v10 = vclz %v631_v8 }
  0xd8   :  { %v263_v61 = vshll.u32 %v996_v11, 30  ;;  %v286_v57 = vsub.s32 4, %v996_v11 }
  0xd9   :  { %v632_v12 = vadd.s32 4294967294, %v165_v10 }
  0xda   :  { %v264_v14 = vsub.s32 %v260_v7, %v263_v61  ;;  %v287_v29 = vsel %vm202_vm3, %v286_v57, %v996_v11 }
  0xdb   :  { %vm633_vm15 = vcmp.lt.s32.totalorder %v632_v12, 0  ;;  %v289_v4 = vsel %vm1009_vm4, 0, %v287_v29  ;;  %v748_v29 = vld [vmem:[#allocation5 + $0x20] sm:$0xff]  }
  0xdc   :  { %v168_v13 = vsel %vm633_vm15, 0, %v632_v12  ;;  %v266_v17 = vsub.s32 0, %v264_v14  ;;  %v293_v6 = vand.u32 3, %v289_v4 }
  0xdd   :  { %v169_v15 = vsub.s32 32, %v168_v13  ;;  %v173_v16 = vsub.s32 4294967266, %v168_v13  ;;  %v170_v20 = vshll.u32 %v161_v3, %v168_v13 }
  0xde   :  { %v635_v24 = vmin.u32 %v266_v17, %v264_v14  ;;  %vm298_vm9 = vcmp.eq.s32.totalorder %v293_v6, 2  ;;  %vm295_vm10 = vcmp.eq.s32.totalorder %v293_v6, 0  ;;  %vm294_vm11 = vcmp.lt.s32.totalorder %v293_v6, 2  ;;  %v726_v17 = vld [vmem:[#allocation2 + $0x24] ss:$8 sps:$4 sm:$0xff]  }
  0xdf   :  { %v171_v21 = vshrl.u32 %v153_v42, %v169_v15  ;;  %v174_v22 = vadd.s32 127, %v173_v16  ;;  %v722_v42 = vld [vmem:[#allocation2] ss:$8 sps:$4 sm:$0xff]   ;;  %v723_v15 = vld [vmem:[#allocation2 + $0x14] ss:$8 sps:$4 sm:$0xff]  }
  0xe0   :  { %v268_v30 = vclz %v635_v24  ;;  %v725_v16 = vld [vmem:[#allocation2 + $0x10] ss:$8 sps:$4 sm:$0xff]   ;;  %v734_v24 = vld [vmem:[#allocation2 + $0x40] ss:$8 sps:$4 sm:$0xff]  }
  0xe1   :  { %v172_v27 = vor.u32 %v171_v21, %v170_v20  ;;  %v175_v28 = vshll.u32 %v174_v22, 23  ;;  %v728_v20 = vld [vmem:[#allocation2 + $0x20] ss:$8 sps:$4 sm:$0xff]   ;;  %v729_v21 = vld [vmem:[#allocation2 + $0x34] ss:$8 sps:$4 sm:$0xff]  }
  0xe2   :  { %v636_v32 = vadd.s32 4294967294, %v268_v30  ;;  %v731_v22 = vld [vmem:[#allocation2 + $0x30] ss:$8 sps:$4 sm:$0xff]   ;;  %v738_v30 = vld [vmem:[#allocation2 + $0x64] ss:$8 sps:$4 sm:$0xff]  }
  0xe3   :  { %v176_v31 = vor.u32 4788187, %v175_v28  ;;  %v179_v34 = vcvt.s32.f32 %v172_v27  ;;  %v735_v27 = vld [vmem:[#allocation2 + $0x54] ss:$8 sps:$4 sm:$0xff]   ;;  %v737_v28 = vld [vmem:[#allocation2 + $0x50] ss:$8 sps:$4 sm:$0xff]  }
  0xe4   :  { %vm637_vm0 = vcmp.lt.s32.totalorder %v636_v32, 0 }
  0xe5   :  { %v177_v33 = vand.u32 2147483647, %v176_v31  ;;  %v271_v36 = vsel %vm637_vm0, 0, %v636_v32  ;;  %v740_v31 = vld [vmem:[#allocation2 + $0x60] ss:$8 sps:$4 sm:$0xff]  }
  0xe6   :  { %v272_v18 = vsub.s32 32, %v271_v36  ;;  %v276_v26 = vsub.s32 4294967266, %v271_v36  ;;  %v273_v41 = vshll.u32 %v264_v14, %v271_v36  ;;  %v720_v14 = vld [vmem:[#allocation2 + $0x4] ss:$8 sps:$4 sm:$0xff]   ;;  %v741_v32 = vld [vmem:[#allocation2 + $0x74] ss:$8 sps:$4 sm:$0xff]  }
  0xe7   :  { %v180_v35 = vmul.f32 %v179_v34, %v177_v33  ;;  %445 = vmatprep.subr.bf16.mxu0 %v720_v14  ;;  %v743_v33 = vld [vmem:[#allocation2 + $0x70] ss:$8 sps:$4 sm:$0xff]  }
  0xe8   :  { %v274_v40 = vshrl.u32 %v256_v37, %v272_v18  ;;  %v277_v43 = vadd.s32 127, %v276_v26  ;;  %446 = vmatpush1.bf16.msra.mxu0 %v722_v42 }
  0xe9   :  { %v181_v38 = vxor.u32 2147483648, %v180_v35  ;;  %447 = vmatprep.subr.bf16.mxu0 %v723_v15 }
  0xea   :  { %v275_v46 = vor.u32 %v274_v40, %v273_v41  ;;  %v278_v47 = vshll.u32 %v277_v43, 23 }
  0xeb   :  { %v182_v44 = vsel %vm99_vm1, %v181_v38, %v180_v35 }
  0xec   :  { %v185_v39 = vsel %vm98_vm2, %v939_v19, %v182_v44  ;;  %v279_v48 = vor.u32 4788187, %v278_v47  ;;  %v282_v51 = vcvt.s32.f32 %v275_v46  ;;  %448 = vmatpush1.bf16.msra.mxu0 %v725_v16 }
  0xed   :  { %752 = vcosq.f32 %v185_v39  ;;  %449 = vmatprep.subr.bf16.mxu0 %v726_v17 }
  0xee   :  { %754 = vsinq.f32 %v185_v39  ;;  %v280_v50 = vand.u32 2147483647, %v279_v48 }
  0xf0   :  { %v283_v53 = vmul.f32 %v282_v51, %v280_v50  ;;  %450 = vmatpush1.bf16.msra.mxu0 %v728_v20  ;;  %v638_v50 = vld [vmem:[%s1052_s3] ss:$0 sm:$0xff]  ;;  %s859_s3 = smov [#allocation7]  }
  0xf1   :  { %451 = vmatprep.subr.bf16.mxu0 %v729_v21  ;;  %s617_s4 = sshll.u32 %s859_s3, 4  ;;  %s618_s4 = int_to_ptr.vmem [resolvable:$true] %s617_s4 }
  0xf2   :  { %v284_v54 = vxor.u32 2147483648, %v283_v53  ;;  %s816_s15 = scalar_lea.vmem %s618_s4, 256  ;;  %p821_p3 = scmp.lt.s32.totalorder %s618_s4, %s618_s4 }
  0xf3   :  { %p817_p2 = scmp.ne.s32.totalorder %s618_s4, %s816_s15  ;;  %p822_p4 = scmp.lt.s32.totalorder %s816_s15, %s816_s15 }
  0xf4   :  { %v285_v56 = vsel %vm202_vm3, %v284_v54, %v283_v53  ;;  %452 = vmatpush1.bf16.msra.mxu0 %v731_v22 }
  0xf5   :  { %v288_v59 = vsel %vm1009_vm4, %v943_v25, %v285_v56  ;;  %v732_v25 = vld [vmem:[#allocation2 + $0x44] ss:$8 sps:$4 sm:$0xff]   ;;  %p823_p5 = por %p822_p4, %p821_p3 }
  0xf6   :  { %756 = vcosq.f32 %v288_v59  ;;  %453 = vmatprep.subr.bf16.mxu0 %v732_v25 }
  0xf7   :  { %v753_v58 = vpop.eup %752  ;;  %758 = vsinq.f32 %v288_v59  ;;  %v744_v59 = vld [vmem:[#allocation5] sm:$0xff]   ;;  %p824_p6 = pnand %p823_p5, %p817_p2 }
  0xf8   :  { %v755_v60 = vpop.eup %754  ;;  %v196_v62 = vxor.u32 2147483648, %v753_v58  ;;  %454 = vmatpush1.bf16.msra.mxu0 %v734_v24 }
  0xf9   :  { %v193_v63 = vxor.u32 2147483648, %v755_v60  ;;  %455 = vmatprep.subr.bf16.mxu0 %v735_v27 }
  0xfa   :  { %v197_v0 = vsel %vm195_vm5, %v196_v62, %v755_v60  ;;  %v857_v60 = vmov 0.0   ;;  %v745_v62 = vld [vmem:[#allocation5 + $0x8] sm:$0xff]  }
  0xfb   :  { %v194_v1 = vsel %vm192_vm6, %v753_v58, %v193_v63  ;;  %675 = vmatprep.subr.bf16.mxu1 %v857_v60  ;;  %v746_v63 = vld [vmem:[#allocation5 + $0x10] sm:$0xff]   ;;  %691 = vmatprep.mubr.msk.bf16.mxu1 %vm858_vm13, %v857_v60 }
  0xfc   :  { %v198_v2 = vsel %vm191_vm7, %v194_v1, %v197_v0  ;;  %456 = vmatpush1.bf16.msra.mxu0 %v737_v28  ;;  %676 = vmatpush3.bf16.msra.mxu1 %v744_v59  ;;  %v747_v0 = vld [vmem:[#allocation5 + $0x18] sm:$0xff]   ;;  %v749_v1 = vld [vmem:[#allocation5 + $0x28] sm:$0xff]  }
  0xfd   :  { %v1019_v3 = vsel %vm189_vm8, nan, %v198_v2  ;;  %457 = vmatprep.subr.bf16.mxu0 %v738_v30  ;;  %677 = vmatprep.subr.bf16.mxu1 %v857_v60  ;;  %v750_v2 = vld [vmem:[#allocation5 + $0x30] sm:$0xff]  }
  0xfe   :  { %303 = vadd.xlane.f32.xlu1 %v1019_v3  ;;  %v310_v5 = vmul.f32 %v1019_v3, %v1019_v3 }
 0x100   :  { %312 = vadd.xlane.f32.xlu0 %v310_v5  ;;  %v757_v7 = vpop.eup %756  ;;  %458 = vmatpush1.bf16.msra.mxu0 %v740_v31 }
 0x101   :  { %v759_v8 = vpop.eup %758  ;;  %v299_v9 = vxor.u32 2147483648, %v757_v7  ;;  %459 = vmatprep.subr.bf16.mxu0 %v741_v32  ;;  %678 = vmatpush3.bf16.msra.mxu1 %v745_v62 }
 0x102   :  { %v296_v10 = vxor.u32 2147483648, %v759_v8  ;;  %679 = vmatprep.subr.bf16.mxu1 %v857_v60 }
 0x103   :  { %v300_v19 = vsel %vm298_vm9, %v299_v9, %v759_v8 }
 0x104   :  { %v297_v11 = vsel %vm295_vm10, %v757_v7, %v296_v10  ;;  %460 = vmatpush1.bf16.msra.mxu0 %v743_v33 }
 0x105   :  { %v301_v12 = vsel %vm294_vm11, %v297_v11, %v300_v19  ;;  %680 = vmatpush3.bf16.msra.mxu1 %v746_v63 }
 0x106   :  { %v302_v61 = vsel %vm292_vm12, nan, %v301_v12  ;;  %681 = vmatprep.subr.bf16.mxu1 %v857_v60 }
 0x107   :  { %305 = vadd.xlane.f32.xlu1 %v302_v61  ;;  %v311_v13 = vmul.f32 %v302_v61, %v302_v61 }
 0x109   :  { %682 = vmatpush3.bf16.msra.mxu1 %v747_v0 }
 0x10a   :  { %683 = vmatprep.subr.bf16.mxu1 %v857_v60 }
 0x10b   :  { %314 = vadd.xlane.f32.xlu1 %v311_v13 }
 0x10d   :  { %684 = vmatpush3.bf16.msra.mxu1 %v748_v29 }
 0x10e   :  { %685 = vmatprep.subr.bf16.mxu1 %v857_v60 }
 0x111   :  { %686 = vmatpush3.bf16.msra.mxu1 %v749_v1 }
 0x112   :  { %687 = vmatprep.subr.bf16.mxu1 %v857_v60 }
 0x115   :  { %688 = vmatpush3.bf16.msra.mxu1 %v750_v2 }
 0x116   :  { %689 = vmatprep.subr.bf16.mxu1 %v857_v60 }
 0x18b   :  { %v304_v34 = vpop.xlane.xlu1 %303 }
 0x18c   :  { %v308_v35 = vmul.f32 0.0078125, %v304_v34 }
 0x18d   :  { %v313_v36 = vpop.xlane.xlu0 %312 }
 0x18e   :  { %v318_v37 = vmul.f32 %v308_v35, %v308_v35  ;;  %v316_v18 = vmul.f32 0.0078125, %v313_v36  ;;  %v322_v48 = vsub.f32 %v1019_v3, %v308_v35  ;;  %v751_v3 = vld [vmem:[#allocation5 + $0x38] sm:$0xff]  }
 0x18f   :  { %690 = vmatpush3.bf16.msra.mxu1 %v751_v3 }
 0x190   :  { %v320_v26 = vsub.f32 %v316_v18, %v318_v37 }
 0x192   :  { %v324_v41 = vadd.f32 1e-05, %v320_v26 }
 0x194   :  { %v306_v38 = vpop.xlane.xlu1 %305  ;;  %760 = vrsqrt.f32 %v324_v41 }
 0x195   :  { %v309_v40 = vmul.f32 0.0078125, %v306_v38 }
 0x197   :  { %v319_v44 = vmul.f32 %v309_v40, %v309_v40  ;;  %v323_v51 = vsub.f32 %v302_v61, %v309_v40 }
 0x198   :  { %v315_v43 = vpop.xlane.xlu1 %314 }
 0x199   :  { %v317_v45 = vmul.f32 0.0078125, %v315_v43 }
 0x19b   :  { %v321_v39 = vsub.f32 %v317_v45, %v319_v44 }
 0x19d   :  { %v325_v46 = vadd.f32 1e-05, %v321_v39 }
 0x19e   :  { %v761_v47 = vpop.eup %760 }
 0x19f   :  { %762 = vrsqrt.f32 %v325_v46  ;;  %v328_v49 = vmul.f32 %v761_v47, %v322_v48 }
 0x1a1   :  { %v337_v54 = vmul.f32 %v638_v50, %v328_v49 }
 0x1a3   :  { %v346_v56 = vadd.f32 %v639_v55, %v337_v54 }
 0x1a9   :  { %v763_v52 = vpop.eup %762 }
 0x1aa   :  { %v329_v53 = vmul.f32 %v763_v52, %v323_v51 }
 0x1ac   :  { %v338_v23 = vmul.f32 %v638_v50, %v329_v53 }
 0x1ae   :  { %v347_v57 = vadd.f32 %v639_v55, %v338_v23 }
 0x1b0   :  { %v348_v58 = vpack.c.bf16 %v347_v57, %v346_v56 }
 0x1b2   :  { %478 = vmatmul.mubr.bf16.vlgmr.msra.gmra.mrb[0].mxu0 %v348_v58 }
 0x285   :  { %v479_v4 = vpop.f32.mrb[0].mxu0 }
 0x286   :  { %v656_v5 = vmul.f32 -1.442695, %v479_v4  ;;  %v481_v6 = vpop.f32.mrb[1].mxu0 }
 0x287   :  { %v483_v7 = vpop.f32.mrb[2].mxu0 }
 0x288   :  { %764 = vpow2.f32 %v656_v5  ;;  %v657_v8 = vmul.f32 -1.442695, %v483_v7  ;;  %v485_v9 = vpop.f32.mrb[3].mxu0 }
 0x28a   :  { %766 = vpow2.f32 %v657_v8 }
 0x292   :  { %v765_v10 = vpop.eup %764 }
 0x293   :  { %v494_v19 = vadd.f32 1.0, %v765_v10 }
 0x294   :  { %v767_v11 = vpop.eup %766 }
 0x295   :  { %768 = vrcp.f32 %v494_v19  ;;  %v495_v12 = vadd.f32 1.0, %v767_v11 }
 0x297   :  { %770 = vrcp.f32 %v495_v12 }
 0x29f   :  { %v769_v61 = vpop.eup %768 }
 0x2a0   :  { %v500_v13 = vmul.f32 %v769_v61, %v479_v4 }
 0x2a1   :  { %v771_v14 = vpop.eup %770 }
 0x2a2   :  { %v502_v42 = vmul.f32 %v500_v13, %v481_v6  ;;  %v501_v15 = vmul.f32 %v771_v14, %v483_v7 }
 0x2a4   :  { %v503_v16 = vmul.f32 %v501_v15, %v485_v9 }
 0x2a6   :  { %v504_v17 = vpack.c.bf16 %v503_v16, %v502_v42 }
 0x2a8   :  { %692 = vmatmul.mubr.bf16.vlgmr.msra.gmra.mrb[0].mxu1 %v504_v17 }
 0x37b   :  { %v603_v20 = vpop.f32.mrb[0].mxu1 }
 0x37c   :  { %610 = vst [vmem:[#allocation7] sm:$0xff] %v603_v20  ;;  %v693_v21 = vpop.f32.mrb[1].mxu1 }
 0x37d   :  { %v606_v22 = vpop.f32.mrb[2].mxu1 }
 0x37e   :  { %611 = vst [vmem:[#allocation7 + $0x8] sm:$0xff] %v606_v22  ;;  %v694_v25 = vpop.f32.mrb[3].mxu1 }
 0x37f   :  { %827 = shalt.err (!%p824_p6)
}
 0x380   :  { %s828_s18 = scalar_lea.hbm %s1056_s7, 256 }
 0x381   :  { %p829_p7 = scmp.ne.s32.totalorder %s1056_s7, %s828_s18  ;;  %p832_p8 = scmp.lt.u32.totalorder %s828_s18, %s1056_s7 }
 0x383   :  { %p834_p9 = pnand %p832_p8, %p829_p7 }
 0x385   :  { %837 = shalt.err (!%p834_p9)
}
 0x386   :  { %623 = dma.vmem_to_hbm [thread:$0]  %s618_s4, 256, %s1056_s7, [#allocation4], %s845_s11, %s845_s11, %s846_s12  }
 0x387   :  { %842 = dma.done.wait [#allocation4], 256  }
 0x388   :  { %843 = vsyncadd [#allocation4], 4294967040 }
 0x389   :  { %627 = vsyncpa [#allocation3], 1 }
 0x38a   :  { %628 = vsyncpa [#allocation6], 1 }
 0x38b   :  { %629 = vsyncpa [#allocation4], 1 }

</bundles_post_ra>
